<compile_context>
chip_gen: v7x
topology: tpu7x:2x2x1
jax: 0.10.0
libtpu: 0.0.40
codegen_flags: <defaults>
</compile_context>

<pallas_src>
import functools
import math

import jax
import jax.numpy as jnp
from jax.experimental import pallas as pl
from jax.experimental.pallas import tpu as pltpu


_VMEM_LIMIT = 48 * 1024 * 1024  # headroom under v7x's 64 MiB physical VMEM


# ----------------------------------------------------------------------------
# helpers
# ----------------------------------------------------------------------------
def _pick_tile(dim, cap):
    """Largest tile <= cap that evenly divides dim (falls back to the full dim)."""
    if dim <= cap:
        return dim
    t = cap
    while t >= 128:
        if dim % t == 0:
            return t
        t //= 2
    return dim


def _heads_per_group(num_heads, depth):
    """How many heads to pack per attention grid step so the lane dim is 128-dense."""
    if depth % 128 == 0:
        return 1
    g = max(1, 128 // depth)
    if (g * depth) % 128 != 0 or num_heads % g != 0:
        return num_heads  # fall back: all heads in one group (block == full D)
    return g


# ----------------------------------------------------------------------------
# Tiled linear (x @ W + b), accumulator in VMEM
# ----------------------------------------------------------------------------
def _matmul_kernel(x_ref, w_ref, b_ref, o_ref, acc_ref, *, relu):
    @pl.when(pl.program_id(2) == 0)
    def _():
        acc_ref[...] = jnp.zeros_like(acc_ref)

    acc_ref[...] += jnp.dot(x_ref[...], w_ref[...],
                            preferred_element_type=jnp.float32)

    @pl.when(pl.program_id(2) == pl.num_programs(2) - 1)
    def _():
        y = acc_ref[...] + b_ref[...]
        if relu:
            y = jnp.maximum(y, 0.0)
        o_ref[...] = y.astype(o_ref.dtype)


def linear(x2d, w, b, *, relu=False, tm_cap=256, tn_cap=256, tk_cap=512):
    """x2d: (M, K); w: (K, N); b: (N,)  ->  (M, N), tiled with VMEM accumulator."""
    M, K = x2d.shape
    N = w.shape[1]
    tm = _pick_tile(M, tm_cap)
    tn = _pick_tile(N, tn_cap)
    tk = _pick_tile(K, tk_cap)
    grid = (M // tm, N // tn, K // tk)

    return pl.pallas_call(
        functools.partial(_matmul_kernel, relu=relu),
        out_shape=jax.ShapeDtypeStruct((M, N), jnp.float32),
        grid_spec=pltpu.PrefetchScalarGridSpec(
            num_scalar_prefetch=0,
            grid=grid,
            in_specs=[
                pl.BlockSpec((tm, tk), lambda i, j, k: (i, k)),
                pl.BlockSpec((tk, tn), lambda i, j, k: (k, j)),
                pl.BlockSpec((1, tn), lambda i, j, k: (0, j)),
            ],
            out_specs=pl.BlockSpec((tm, tn), lambda i, j, k: (i, j)),
            scratch_shapes=[pltpu.VMEM((tm, tn), jnp.float32)],
        ),
        compiler_params=pltpu.CompilerParams(
            dimension_semantics=("parallel", "parallel", "arbitrary"),
            vmem_limit_bytes=_VMEM_LIMIT),
    )(x2d, w, b.reshape(1, N))


# ----------------------------------------------------------------------------
# Fused FFN: y = relu(x @ W1 + b1) @ W2 + b2  (hidden stays in VMEM)
# ----------------------------------------------------------------------------
def _ffn_kernel(x_ref, w1_ref, b1_ref, w2_ref, b2_ref, o_ref):
    h = jnp.dot(x_ref[...], w1_ref[...], preferred_element_type=jnp.float32)
    h = jnp.maximum(h + b1_ref[...], 0.0)
    y = jnp.dot(h, w2_ref[...], preferred_element_type=jnp.float32) + b2_ref[...]
    o_ref[...] = y.astype(o_ref.dtype)


def ffn_fused(x, w1, b1, w2, b2, *, tm_cap=256):
    B, S, D = x.shape
    M = B * S
    Dh = w1.shape[1]
    tm = _pick_tile(M, tm_cap)
    out = pl.pallas_call(
        _ffn_kernel,
        out_shape=jax.ShapeDtypeStruct((M, D), jnp.float32),
        grid=(M // tm,),
        in_specs=[
            pl.BlockSpec((tm, D), lambda i: (i, 0)),
            pl.BlockSpec((D, Dh), lambda i: (0, 0)),   # weights stay resident
            pl.BlockSpec((1, Dh), lambda i: (0, 0)),
            pl.BlockSpec((Dh, D), lambda i: (0, 0)),
            pl.BlockSpec((1, D), lambda i: (0, 0)),
        ],
        out_specs=pl.BlockSpec((tm, D), lambda i: (i, 0)),
        compiler_params=pltpu.CompilerParams(
            dimension_semantics=("parallel",),
            vmem_limit_bytes=_VMEM_LIMIT),
    )(x.reshape(M, D), w1, b1.reshape(1, Dh), w2, b2.reshape(1, D))
    return out.reshape(B, S, D)


# ----------------------------------------------------------------------------
# Fused residual + LayerNorm, row-tiled
# ----------------------------------------------------------------------------
def _ln_residual_kernel(a_ref, b_ref, g_ref, beta_ref, o_ref, *, eps):
    x = a_ref[...] + b_ref[...]
    mean = jnp.mean(x, axis=-1, keepdims=True)
    c = x - mean
    var = jnp.mean(c * c, axis=-1, keepdims=True)
    o_ref[...] = c * jax.lax.rsqrt(var + eps) * g_ref[...] + beta_ref[...]


def ln_residual(a, b, gamma, beta, eps=1e-5, tm_cap=512):
    """LayerNorm(a + b) over the last dim.  a, b: (B, S, D)."""
    B, S, D = a.shape
    M = B * S
    tm = _pick_tile(M, tm_cap)
    out = pl.pallas_call(
        functools.partial(_ln_residual_kernel, eps=eps),
        out_shape=jax.ShapeDtypeStruct((M, D), jnp.float32),
        grid=(M // tm,),
        in_specs=[
            pl.BlockSpec((tm, D), lambda i: (i, 0)),
            pl.BlockSpec((tm, D), lambda i: (i, 0)),
            pl.BlockSpec((1, D), lambda i: (0, 0)),
            pl.BlockSpec((1, D), lambda i: (0, 0)),
        ],
        out_specs=pl.BlockSpec((tm, D), lambda i: (i, 0)),
        compiler_params=pltpu.CompilerParams(
            dimension_semantics=("parallel",),
            vmem_limit_bytes=_VMEM_LIMIT),
    )(a.reshape(M, D), b.reshape(M, D), gamma.reshape(1, D), beta.reshape(1, D))
    return out.reshape(B, S, D)


# ----------------------------------------------------------------------------
# Multi-head attention core.  One grid step = (batch, head-group); head groups
# are sliced straight out of the packed projection arrays by the BlockSpec
# index_map (no JAX-level split_heads transpose), and the output is written back
# already in the merged-head (B, Sq, D) layout.
# ----------------------------------------------------------------------------
def _attn_kernel(q_ref, k_ref, v_ref, o_ref, *, group, depth, scale):
    q = q_ref[0]  # (Sq, group*depth)
    k = k_ref[0]  # (Sk, group*depth)
    v = v_ref[0]  # (Sk, group*depth)
    outs = []
    for g in range(group):
        lo, hi = g * depth, (g + 1) * depth
        qh, kh, vh = q[:, lo:hi], k[:, lo:hi], v[:, lo:hi]
        # scores: contract last axes (no explicit k.T -> keeps the XLU idle)
        s = jax.lax.dot_general(qh, kh, (((1,), (1,)), ((), ())),
                                preferred_element_type=jnp.float32) * scale
        m = jnp.max(s, axis=-1, keepdims=True)
        p = jnp.exp(s - m)
        l = jnp.sum(p, axis=-1, keepdims=True)
        p = p * pl.reciprocal(l, approx=False)
        outs.append(jnp.dot(p, vh, preferred_element_type=jnp.float32))
    o_ref[0] = jnp.concatenate(outs, axis=-1)  # single lane-dense store


def multihead_attention(q_src, k_src, v_src, *, num_heads, depth,
                        q_col0, k_col0, v_col0):
    """q_src: (B, Sq, Wq) holding the Q projection at column offset q_col0;
    k_src/v_src likewise (may all be the same packed array)."""
    # TODO(synk): for long sequences convert to a flash-style kernel (KV-tiled
    # "arbitrary" grid axis + online softmax) to bound the (Sq, Sk) score matrix.
    B, Sq, _ = q_src.shape
    Sk = k_src.shape[1]
    D = num_heads * depth
    G = _heads_per_group(num_heads, depth)
    gd = G * depth
    n_groups = num_heads // G
    scale = 1.0 / math.sqrt(float(depth))

    assert q_col0 % gd == 0 and k_col0 % gd == 0 and v_col0 % gd == 0
    qb, kb, vb = q_col0 // gd, k_col0 // gd, v_col0 // gd

    return pl.pallas_call(
        functools.partial(_attn_kernel, group=G, depth=depth, scale=scale),
        out_shape=jax.ShapeDtypeStruct((B, Sq, D), jnp.float32),
        grid=(B, n_groups),
        in_specs=[
            pl.BlockSpec((1, Sq, gd), lambda b, g, qb=qb: (b, 0, qb + g)),
            pl.BlockSpec((1, Sk, gd), lambda b, g, kb=kb: (b, 0, kb + g)),
            pl.BlockSpec((1, Sk, gd), lambda b, g, vb=vb: (b, 0, vb + g)),
        ],
        out_specs=pl.BlockSpec((1, Sq, gd), lambda b, g: (b, 0, g)),
        compiler_params=pltpu.CompilerParams(
            dimension_semantics=("parallel", "parallel"),
            vmem_limit_bytes=_VMEM_LIMIT),
    )(q_src, k_src, v_src)


# ----------------------------------------------------------------------------
# Model pieces (glue in plain JAX, all math in Pallas)
# ----------------------------------------------------------------------------
def self_attention_block(x, p, num_heads):
    B, S, D = x.shape
    depth = D // num_heads
    # fused Q/K/V projection: one (D, 3D) matmul, one read of x
    qkv = linear(x.reshape(B * S, D), p["wqkv_w"], p["wqkv_b"]).reshape(B, S, 3 * D)
    attn = multihead_attention(qkv, qkv, qkv, num_heads=num_heads, depth=depth,
                               q_col0=0, k_col0=D, v_col0=2 * D)
    out = linear(attn.reshape(B * S, D), p["dense_w"], p["dense_b"])
    return out.reshape(B, S, D)


def cross_attention_block(x, enc, p, num_heads):
    B, Sq, D = x.shape
    Sk = enc.shape[1]
    depth = D // num_heads
    q = linear(x.reshape(B * Sq, D), p["wq_w"], p["wq_b"]).reshape(B, Sq, D)
    # fused K/V projection of the encoder output: one (D, 2D) matmul
    kv = linear(enc.reshape(B * Sk, D), p["wkv_w"], p["wkv_b"]).reshape(B, Sk, 2 * D)
    attn = multihead_attention(q, kv, kv, num_heads=num_heads, depth=depth,
                               q_col0=0, k_col0=0, v_col0=D)
    out = linear(attn.reshape(B * Sq, D), p["dense_w"], p["dense_b"])
    return out.reshape(B, Sq, D)


def encoder_layer(x, p, num_heads):
    attn = self_attention_block(x, p["mha"], num_heads)
    out1 = ln_residual(x, attn, p["ln1_g"], p["ln1_b"])
    ffn = ffn_fused(out1, p["ffn_w1"], p["ffn_b1"], p["ffn_w2"], p["ffn_b2"])
    out2 = ln_residual(out1, ffn, p["ln2_g"], p["ln2_b"])
    return out2


def decoder_layer(x, enc_output, p, num_heads):
    attn1 = self_attention_block(x, p["mha1"], num_heads)
    out1 = ln_residual(attn1, x, p["ln1_g"], p["ln1_b"])
    attn2 = cross_attention_block(out1, enc_output, p["mha2"], num_heads)
    out2 = ln_residual(attn2, out1, p["ln2_g"], p["ln2_b"])
    ffn = ffn_fused(out2, p["ffn_w1"], p["ffn_b1"], p["ffn_w2"], p["ffn_b2"])
    out3 = ln_residual(ffn, out2, p["ln3_g"], p["ln3_b"])
    return out3


def transformer_forward(inp, tar, params, num_heads):
    enc_output = inp
    for p in params["encoder_layers"]:
        enc_output = encoder_layer(enc_output, p, num_heads)
    dec_output = tar
    for p in params["decoder_layers"]:
        dec_output = decoder_layer(dec_output, enc_output, p, num_heads)
    return dec_output


# ----------------------------------------------------------------------------
# Deterministic parameter init (synthetic; shapes follow the PyTorch module,
# with Q/K/V weights pre-concatenated for the fused projections)
# ----------------------------------------------------------------------------
def _init_linear(key, din, dout, scale=0.05):
    kw, kb = jax.random.split(key)
    w = jax.random.normal(kw, (din, dout), jnp.float32) * scale
    b = jax.random.normal(kb, (dout,), jnp.float32) * scale
    return w, b


def _init_self_mha(key, d_model):
    kq, kk, kv, kd = jax.random.split(key, 4)
    wq, bq = _init_linear(kq, d_model, d_model)
    wk, bk = _init_linear(kk, d_model, d_model)
    wv, bv = _init_linear(kv, d_model, d_model)
    wd, bd = _init_linear(kd, d_model, d_model)
    return {"wqkv_w": jnp.concatenate([wq, wk, wv], axis=1),
            "wqkv_b": jnp.concatenate([bq, bk, bv], axis=0),
            "dense_w": wd, "dense_b": bd}


def _init_cross_mha(key, d_model):
    kq, kk, kv, kd = jax.random.split(key, 4)
    wq, bq = _init_linear(kq, d_model, d_model)
    wk, bk = _init_linear(kk, d_model, d_model)
    wv, bv = _init_linear(kv, d_model, d_model)
    wd, bd = _init_linear(kd, d_model, d_model)
    return {"wq_w": wq, "wq_b": bq,
            "wkv_w": jnp.concatenate([wk, wv], axis=1),
            "wkv_b": jnp.concatenate([bk, bv], axis=0),
            "dense_w": wd, "dense_b": bd}


def _init_encoder_layer(key, d_model):
    k1, k2, k3 = jax.random.split(key, 3)
    w1, b1 = _init_linear(k2, d_model, 4 * d_model)
    w2, b2 = _init_linear(k3, 4 * d_model, d_model)
    return {
        "mha": _init_self_mha(k1, d_model),
        "ffn_w1": w1, "ffn_b1": b1, "ffn_w2": w2, "ffn_b2": b2,
        "ln1_g": jnp.ones((d_model,), jnp.float32), "ln1_b": jnp.zeros((d_model,), jnp.float32),
        "ln2_g": jnp.ones((d_model,), jnp.float32), "ln2_b": jnp.zeros((d_model,), jnp.float32),
    }


def _init_decoder_layer(key, d_model):
    k1, k2, k3, k4 = jax.random.split(key, 4)
    w1, b1 = _init_linear(k3, d_model, 4 * d_model)
    w2, b2 = _init_linear(k4, 4 * d_model, d_model)
    return {
        "mha1": _init_self_mha(k1, d_model),
        "mha2": _init_cross_mha(k2, d_model),
        "ffn_w1": w1, "ffn_b1": b1, "ffn_w2": w2, "ffn_b2": b2,
        "ln1_g": jnp.ones((d_model,), jnp.float32), "ln1_b": jnp.zeros((d_model,), jnp.float32),
        "ln2_g": jnp.ones((d_model,), jnp.float32), "ln2_b": jnp.zeros((d_model,), jnp.float32),
        "ln3_g": jnp.ones((d_model,), jnp.float32), "ln3_b": jnp.zeros((d_model,), jnp.float32),
    }


def init_transformer(key, d_model, num_encoder_layers, num_decoder_layers):
    ke, kd = jax.random.split(key)
    enc_keys = jax.random.split(ke, num_encoder_layers)
    dec_keys = jax.random.split(kd, num_decoder_layers)
    return {
        "encoder_layers": [_init_encoder_layer(k, d_model) for k in enc_keys],
        "decoder_layers": [_init_decoder_layer(k, d_model) for k in dec_keys],
    }


# ----------------------------------------------------------------------------
# Pure-JAX reference (for the correctness sanity check)
# ----------------------------------------------------------------------------
def _ref_attention(q_in, k_in, v_in, wq, bq, wk, bk, wv, bv, wd, bd, num_heads):
    B, Sq, D = q_in.shape
    Sk = k_in.shape[1]
    depth = D // num_heads
    q = (q_in @ wq + bq).reshape(B, Sq, num_heads, depth).transpose(0, 2, 1, 3)
    k = (k_in @ wk + bk).reshape(B, Sk, num_heads, depth).transpose(0, 2, 1, 3)
    v = (v_in @ wv + bv).reshape(B, Sk, num_heads, depth).transpose(0, 2, 1, 3)
    s = jnp.einsum("bhqd,bhkd->bhqk", q, k) / jnp.sqrt(jnp.float32(depth))
    a = jax.nn.softmax(s, axis=-1)
    o = jnp.einsum("bhqk,bhkd->bhqd", a, v).transpose(0, 2, 1, 3).reshape(B, Sq, D)
    return o @ wd + bd


def _ref_self_mha(x, p, num_heads):
    D = x.shape[-1]
    w, b = p["wqkv_w"], p["wqkv_b"]
    return _ref_attention(x, x, x,
                          w[:, :D], b[:D], w[:, D:2 * D], b[D:2 * D],
                          w[:, 2 * D:], b[2 * D:], p["dense_w"], p["dense_b"],
                          num_heads)


def _ref_cross_mha(x, enc, p, num_heads):
    D = x.shape[-1]
    w, b = p["wkv_w"], p["wkv_b"]
    return _ref_attention(x, enc, enc,
                          p["wq_w"], p["wq_b"], w[:, :D], b[:D],
                          w[:, D:], b[D:], p["dense_w"], p["dense_b"],
                          num_heads)


def _ref_ln(x, g, b, eps=1e-5):
    m = jnp.mean(x, axis=-1, keepdims=True)
    v = jnp.mean((x - m) ** 2, axis=-1, keepdims=True)
    return (x - m) / jnp.sqrt(v + eps) * g + b


def _ref_transformer(inp, tar, params, num_heads):
    enc = inp
    for p in params["encoder_layers"]:
        a = _ref_self_mha(enc, p["mha"], num_heads)
        o1 = _ref_ln(enc + a, p["ln1_g"], p["ln1_b"])
        f = jnp.maximum(o1 @ p["ffn_w1"] + p["ffn_b1"], 0.0) @ p["ffn_w2"] + p["ffn_b2"]
        enc = _ref_ln(o1 + f, p["ln2_g"], p["ln2_b"])
    dec = tar
    for p in params["decoder_layers"]:
        a1 = _ref_self_mha(dec, p["mha1"], num_heads)
        o1 = _ref_ln(a1 + dec, p["ln1_g"], p["ln1_b"])
        a2 = _ref_cross_mha(o1, enc, p["mha2"], num_heads)
        o2 = _ref_ln(a2 + o1, p["ln2_g"], p["ln2_b"])
        f = jnp.maximum(o2 @ p["ffn_w1"] + p["ffn_b1"], 0.0) @ p["ffn_w2"] + p["ffn_b2"]
        dec = _ref_ln(f + o2, p["ln3_g"], p["ln3_b"])
    return dec


# ----------------------------------------------------------------------------
if __name__ == "__main__":
    # small shapes consistent with the module's forward (d_model scaled down,
    # num_heads=8 kept from the spec -> depth=32, 4 heads per 128-lane group)
    B, S, D, H = 2, 8, 256, 8
    NUM_ENC, NUM_DEC = 2, 2

    root = jax.random.PRNGKey(0)
    k_inp, k_tar, k_par = jax.random.split(root, 3)
    inp = jax.random.normal(k_inp, (B, S, D), jnp.float32)
    tar = jax.random.normal(k_tar, (B, S, D), jnp.float32)
    params = init_transformer(k_par, D, NUM_ENC, NUM_DEC)

    out = transformer_forward(inp, tar, params, H)
    out = jax.block_until_ready(out)

    ref = _ref_transformer(inp, tar, params, H)
    assert out.shape == (B, S, D)
    assert jnp.allclose(out, ref, rtol=2e-4, atol=2e-4), "mismatch vs JAX reference"

    print("KERNEL_OK")
</pallas_src>

<mosaic_0001>
module attributes {stable_mosaic.version = 11 : i64} {
  func.func @_matmul_kernel(%arg0: i32, %arg1: i32, %arg2: i32, %arg3: memref<16x256xf32, #tpu.memory_space<vmem>>, %arg4: memref<256x256xf32, #tpu.memory_space<vmem>>, %arg5: memref<1x256xf32, #tpu.memory_space<vmem>>, %arg6: memref<16x256xf32, #tpu.memory_space<vmem>>, %arg7: memref<16x256xf32, #tpu.memory_space<vmem>>) attributes {dimension_semantics = [#tpu.dimension_semantics<parallel>, #tpu.dimension_semantics<parallel>, #tpu.dimension_semantics<arbitrary>], iteration_bounds = array<i64: 1, 3, 1>, scalar_prefetch = 0 : i64, scratch_operands = 1 : i64, tpu.core_type = #tpu.core_type<tc>, window_params = [{transform_indices = @transform_0, window_bounds = array<i64: 16, 256>}, {transform_indices = @transform_1, window_bounds = array<i64: 256, 256>}, {transform_indices = @transform_2, window_bounds = array<i64: 1, 256>}, {transform_indices = @transform_3, window_bounds = array<i64: 16, 256>}]} {
    %c0_i32 = arith.constant 0 : i32
    %0 = arith.cmpi eq, %arg2, %c0_i32 : i32
    %1 = arith.extui %0 : i1 to i32
    %c0_i32_0 = arith.constant 0 : i32
    %2 = arith.cmpi ne, %1, %c0_i32_0 : i32
    scf.if %2 {
      %cst_10 = arith.constant 0.000000e+00 : f32
      %12 = vector.broadcast %cst_10 : f32 to vector<16x256xf32>
      %c0_11 = arith.constant 0 : index
      %c0_12 = arith.constant 0 : index
      %13 = vector.load %arg7[%c0_11, %c0_12] : memref<16x256xf32, #tpu.memory_space<vmem>>, vector<16x256xf32>
      tpu.vector_store %arg7[%c0_11, %c0_12], %12 {strides = array<i32>} : memref<16x256xf32, #tpu.memory_space<vmem>>, vector<16x256xf32>,
    } else {
    }
    %c0 = arith.constant 0 : index
    %c0_1 = arith.constant 0 : index
    %3 = vector.load %arg7[%c0, %c0_1] : memref<16x256xf32, #tpu.memory_space<vmem>>, vector<16x256xf32>
    %c0_2 = arith.constant 0 : index
    %c0_3 = arith.constant 0 : index
    %4 = vector.load %arg3[%c0_2, %c0_3] : memref<16x256xf32, #tpu.memory_space<vmem>>, vector<16x256xf32>
    %c0_4 = arith.constant 0 : index
    %c0_5 = arith.constant 0 : index
    %5 = vector.load %arg4[%c0_4, %c0_5] : memref<256x256xf32, #tpu.memory_space<vmem>>, vector<256x256xf32>
    %cst = arith.constant dense<0.000000e+00> : vector<16x256xf32>
    %6 = tpu.matmul %4, %5, %cst {dimension_numbers = #tpu.dot_dimension_numbers<[1], [0], [0], [1], [0, 0, 1, 1], [], []>} : vector<16x256xf32>, vector<256x256xf32>, vector<16x256xf32> -> vector<16x256xf32>
    %7 = arith.addf %3, %6 : vector<16x256xf32>
    %c0_6 = arith.constant 0 : index
    %c0_7 = arith.constant 0 : index
    %8 = vector.load %arg7[%c0_6, %c0_7] : memref<16x256xf32, #tpu.memory_space<vmem>>, vector<16x256xf32>
    tpu.vector_store %arg7[%c0_6, %c0_7], %7 {strides = array<i32>} : memref<16x256xf32, #tpu.memory_space<vmem>>, vector<16x256xf32>,
    %c0_i32_8 = arith.constant 0 : i32
    %9 = arith.cmpi eq, %arg2, %c0_i32_8 : i32
    %10 = arith.extui %9 : i1 to i32
    %c0_i32_9 = arith.constant 0 : i32
    %11 = arith.cmpi ne, %10, %c0_i32_9 : i32
    scf.if %11 {
      %c0_10 = arith.constant 0 : index
      %c0_11 = arith.constant 0 : index
      %12 = vector.load %arg7[%c0_10, %c0_11] : memref<16x256xf32, #tpu.memory_space<vmem>>, vector<16x256xf32>
      %c0_12 = arith.constant 0 : index
      %c0_13 = arith.constant 0 : index
      %13 = vector.load %arg5[%c0_12, %c0_13] : memref<1x256xf32, #tpu.memory_space<vmem>>, vector<1x256xf32>
      %14 = vector.broadcast %13 : vector<1x256xf32> to vector<16x256xf32>
      %15 = arith.addf %12, %14 : vector<16x256xf32>
      %c0_14 = arith.constant 0 : index
      %c0_15 = arith.constant 0 : index
      %16 = vector.load %arg6[%c0_14, %c0_15] : memref<16x256xf32, #tpu.memory_space<vmem>>, vector<16x256xf32>
      tpu.vector_store %arg6[%c0_14, %c0_15], %15 {strides = array<i32>} : memref<16x256xf32, #tpu.memory_space<vmem>>, vector<16x256xf32>,
    } else {
    }
    return
  }
  func.func @transform_0(%arg0: i32, %arg1: i32, %arg2: i32) -> (i32, i32) {
    %c0_i32 = arith.constant 0 : i32
    return %arg0, %arg2 : i32, i32
  }
  func.func @transform_1(%arg0: i32, %arg1: i32, %arg2: i32) -> (i32, i32) {
    %c0_i32 = arith.constant 0 : i32
    return %arg2, %arg1 : i32, i32
  }
  func.func @transform_2(%arg0: i32, %arg1: i32, %arg2: i32) -> (i32, i32) {
    %c0_i32 = arith.constant 0 : i32
    %c0_i32_0 = arith.constant 0 : i32
    return %c0_i32, %arg1 : i32, i32
  }
  func.func @transform_3(%arg0: i32, %arg1: i32, %arg2: i32) -> (i32, i32) {
    %c0_i32 = arith.constant 0 : i32
    return %arg0, %arg1 : i32, i32
  }
}

</mosaic_0001>

<bundles_post_ra>
// kernel: tpu_custom_call.1
= control target key start
LH: loop header
LB: loop body
LE: loop exit
PB: predicated region body
PF: predicated region fallthrough
CT: control target
= control target key end

     0   :  { %8 = vsyncpa [#allocation4], 0  ;;  %s1250_s0 = inlined_call_operand.hbm [shape: f32[16,256], index: 0, kind: input, shape index: {}]   ;;  %s1251_s1 = inlined_call_operand.hbm [shape: f32[256,768], index: 1, kind: input, shape index: {}]   ;;  %s1252_s2 = inlined_call_operand.vmem [shape: f32[1,768], index: 2, kind: input, shape index: {}]   ;;  %s1253_s3 = inlined_call_operand.hbm [shape: f32[16,768], index: 3, kind: output, shape index: {}]  }
   0x1   :  { %9 = vsyncpa [#allocation7], 0 }
   0x2   :  { %11 = vsyncpa [#allocation7 + $0x1], 0 }
   0x3   :  { %12 = vsyncpa [#allocation5], 0 }
   0x4   :  { %14 = vsyncpa [#allocation5 + $0x1], 0  ;;  %s963_s12 = smov 0   ;;  %s965_s13 = smov 0  }
   0x5   :  { %s967_s14 = smov 0   ;;  %s969_s15 = smov 0  }
   0x6   :  { %s971_s16 = smov 0   ;;  %s973_s17 = smov 0  }
   0x7 LB: > { %s593_s18 = sadd.s32 4294967295, %s932_s17   ;;  %s594_s19 = sadd.s32 4294967294, %s932_s17   ;;  %s932_s17 = sphi %s973_s17, %s20_s17   ;;  %s928_s16 = sphi %s971_s16, %s1280_s16   ;;  %s924_s15 = sphi %s969_s15, %s1279_s15   ;;  %s920_s14 = sphi %s967_s14, %s1278_s14   ;;  %s916_s13 = sphi %s965_s13, %s1277_s13   ;;  %s912_s12 = sphi %s963_s12, %s1276_s12  }
   0x8   : > { %p83_p0 = scmp.ne.s32.totalorder %s920_s14, %s916_s13  ;;  %p84_p1 = scmp.eq.s32.totalorder %s932_s17, 0 }
   0x9   : > { %p89_p2 = scmp.ne.s32.totalorder %s916_s13, %s912_s12  ;;  %p1000_p3 = scmp.eq.s32.totalorder %s593_s18, 0 }
   0xa   : > { %p1004_p4 = por %p84_p1, %p83_p0  ;;  %p141_p5 = scmp.eq.s32.totalorder %s593_s18, 2 }
   0xb   : > { %s1261_s20 = scalar_select %p1000_p3, 1, 0 }
   0xc   : > { %p1010_p6 = por %p1000_p3, %p89_p2  ;;  %p147_p7 = scmp.eq.s32.totalorder %s594_s19, 2 }
   0xd   : > { %p1014_p8 = por %p141_p5, %p83_p0  ;;  %p595_p9 = scmp.ge.s32.totalorder %s932_s17, 1 }
   0xe   : > { %s1263_s22 = scalar_select %p1010_p6, 1, 0 }
   0xf   : > { %s1264_s23 = scalar_select %p1014_p8, 1, 0 }
  0x10   : > { %p1019_p10 = por %p147_p7, %p89_p2  ;;  %p154_p11 = scmp.lt.s32.totalorder %s932_s17, 4 }
  0x11   : > { %s934_s26 = smov [#allocation3]   ;;  %p730_p0 = scmp.lt.s32.totalorder %s932_s17, 3 }
  0x12   : > { %s1265_s24 = scalar_select %p1019_p10, 1, 0 }
  0x13   : > { %p1024_p12 = pnand %p595_p9, %p154_p11  ;;  %s172_s27 = sshll.u32 %s934_s26, 4  ;;  %s173_s27 = int_to_ptr.vmem [resolvable:$true] %s172_s27 }
  0x14   : > { %p1039_p2 = pnand %p730_p0, %p1004_p4  ;;  %s35_s30 = sadd.s32 1, %s928_s16 }
  0x15   : > { %s1266_s25 = scalar_select %p1024_p12, 1, 0 }
  0x16   : > { %p717_p13 = pneg %p1024_p12  ;;  %s788_s6 = scalar_lea.hbm %s1250_s0, 512 }
  0x17   : > { %s1268_s29 = scalar_select %p1039_p2, 1, 0 }
  0x18   : > { %p1033_p1 = pnand %p717_p13, %p1000_p3  ;;  %p789_p5 = scmp.ne.s32.totalorder %s1250_s0, %s788_s6 }
  0x19   : > { %p795_p4 = scmp.lt.u32.totalorder %s788_s6, %s1250_s0 }
  0x1a   : > { %p790_p7 = pneg %p1033_p1 }
  0x1c   : > { %p791_p9 = pnand %p790_p7, %p789_p5 }
  0x1e   : > { %p792_p11 = pneg %p791_p9 }
  0x20   : > { %p797_p13 = pnand %p795_p4, %p792_p11 }
  0x22   : > { %800 = shalt.err (!%p797_p13)
}
  0x23   : > { %s801_s11 = scalar_lea.vmem %s173_s27, 512  ;;  %p809_p6 = scmp.lt.s32.totalorder %s173_s27, %s173_s27 }
  0x24   : > { %p802_p0 = scmp.ne.s32.totalorder %s173_s27, %s801_s11  ;;  %p810_p3 = scmp.lt.s32.totalorder %s801_s11, %s801_s11 }
  0x26   : > { %p804_p10 = pnand %p802_p0, %p790_p7  ;;  %p811_p12 = por %p810_p3, %p809_p6 }
  0x28   : > { %p805_p8 = pneg %p804_p10 }
  0x2a   : > { %p812_p2 = pnand %p811_p12, %p805_p8 }
  0x2c   : > { %815 = shalt.err (!%p812_p2)
}
  0x2d   : > { %s1260_s18 = smov 256   ;;  %s936_s19 = smov 16  }
  0x2e   : > { %720 = dma.hbm_to_vmem [thread:$0]  (!%p1033_p1), %s1250_s0, 512, %s173_s27, [#allocation4], %s1260_s18, %s1260_s18, %s936_s19  }
  0x2f   : > { %p37_p10 = scmp.ge.s32.totalorder %s35_s30, 3  ;;  %s76_s4 = sadd.s32 1, %s920_s14 }
  0x30   : > { %s186_s5 = sand.u32 1, %s920_s14   ;;  %s611_s8 = sshll.u32 %s928_s16, 8 }
  0x31   : > { %s1282_s30 = smov (%p37_p10, %s35_s30), 0  ;;  %s598_s6 = sshll.u32 %s186_s5, 9 }
  0x32   : > { %s72_s7 = ssub.s32 %s928_s16, %s1282_s30  ;;  %s1073_s10 = scalar_lea.hbm %s1251_s1, %s611_s8 }
  0x33   : > { %p74_p3 = scmp.eq.s32.totalorder %s72_s7, 0  ;;  %s190_s27 = scalar_lea.vmem [#allocation6], %s598_s6 }
  0x34   : > { %s200_s11 = sshll.u32 %s190_s27, 4  ;;  %s1080_s26 = scalar_lea.sflag [#allocation7], %s186_s5  ;;  %s1078_s11 = int_to_ptr.vmem [resolvable:$true] %s200_s11 }
  0x35   : > { %s1076_s21 = scalar_select %p74_p3, %s920_s14, %s76_s4  }
  0x36   : > { %s816_s18 = scalar_lea.hbm %s1073_s10, 8192  ;;  %p1269_p8 = scmp.ne.s32.totalorder %s1268_s29, 0 }
  0x37   : > { %p817_p6 = scmp.ne.s32.totalorder %s1073_s10, %s816_s18  ;;  %s821_s28 = scalar_lea.hbm %s1251_s1, 24576 }
  0x38   : > { %p818_p12 = pneg %p1269_p8  ;;  %p822_p5 = scmp.lt.u32.totalorder %s1073_s10, %s1251_s1 }
  0x39   : > { %p823_p7 = scmp.lt.u32.totalorder %s821_s28, %s816_s18  ;;  %p825_p11 = scmp.lt.u32.totalorder %s816_s18, %s1073_s10 }
  0x3a   : > { %p819_p1 = pnand %p818_p12, %p817_p6 }
  0x3b   : > { %p824_p9 = por %p823_p7, %p822_p5 }
  0x3c   : > { %p820_p2 = pneg %p819_p1 }
  0x3d   : > { %p826_p4 = por %p825_p11, %p824_p9 }
  0x3f   : > { %p827_p13 = pnand %p826_p4, %p820_p2 }
  0x41   : > { %830 = shalt.err (!%p827_p13)
}
  0x42   : > { %s831_s4 = scalar_lea.vmem %s1078_s11, 8192  ;;  %s937_s5 = smov [#allocation6]  }
  0x43   : > { %p832_p0 = scmp.ne.s32.totalorder %s1078_s11, %s831_s4  ;;  %s836_s27 = sshll.u32 %s937_s5, 4  ;;  %s837_s27 = int_to_ptr.vmem [resolvable:$false] %s836_s27 }
  0x44   : > { %s838_s7 = scalar_lea.vmem %s837_s27, 16384  ;;  %p839_p6 = scmp.lt.s32.totalorder %s1078_s11, %s837_s27 }
  0x45   : > { %p834_p10 = pnand %p832_p0, %p818_p12  ;;  %p840_p1 = scmp.lt.s32.totalorder %s838_s7, %s831_s4 }
  0x47   : > { %p835_p3 = pneg %p834_p10  ;;  %p841_p5 = por %p840_p1, %p839_p6 }
  0x49   : > { %p842_p7 = pnand %p841_p5, %p835_p3 }
  0x4b   : > { %845 = shalt.err (!%p842_p7)
}
  0x4c   : > { %s938_s18 = smov 768   ;;  %s1270_s8 = smov 256  }
  0x4d   : > { %724 = dma.hbm_to_vmem [thread:$0]  (!%p1269_p8), %s1073_s10, 8192, %s1078_s11, %s1080_s26, %s938_s18, %s1270_s8, %s936_s19  }
  0x4e   : > { %p1271_p12 = scmp.ne.s32.totalorder %s1266_s25, 0 }
  0x4f   : > { %p1272_p2 = scmp.ne.s32.totalorder (!%p1271_p12), %s1261_s20, 0 }
  0x50   : > { %220 = sbr.rel (%p1271_p12) target bundleno = 390 (0x186), region = 32 }
  0x57   : > { %899 = dma.done.wait (%p1272_p2), [#allocation4], 512  }
  0x58   : > { %901 = vsyncadd (%p1272_p2), [#allocation4], 4294966784  ;;  %s1117_s28 = sand.u32 1, %s916_s13   ;;  %p1273_p8 = scmp.ne.s32.totalorder %s1263_s22, 0 }
  0x59   : > { %s603_s29 = sshll.u32 %s1117_s28, 9  ;;  %s227_s6 = scalar_lea.sflag [#allocation7], %s1117_s28 }
  0x5a   : > { %s1121_s9 = scalar_lea.vmem [#allocation6], %s603_s29 }
  0x5b   : > { %903 = dma.done.wait (%p1273_p8), %s227_s6, 8192  }
  0x5c   : > { %905 = vsyncadd (%p1273_p8), %s227_s6, 4294959104  ;;  %v285_v0 = vld [vmem:[%s1121_s9 + $0x8] sm:$0xff]  ;;  %v287_v1 = vld [vmem:[%s1121_s9 + $0x18] sm:$0xff]  ;;  %s605_s20 = sshll.u32 %s924_s15, 1  ;;  %s604_s22 = sshll.u32 %s1117_s28, 5 }
  0x5d   : > { %v284_v2 = vld [vmem:[%s1121_s9] sm:$0xff]  ;;  %v613_v3 = vpack.c.bf16 %v287_v1, %v285_v0  ;;  %v286_v4 = vld [vmem:[%s1121_s9 + $0x10] sm:$0xff]  ;;  %v289_v5 = vld [vmem:[%s1121_s9 + $0x28] sm:$0xff]  ;;  %p262_p9 = scmp.lt.s32.totalorder %s605_s20, 5  ;;  %s256_s11 = scalar_lea.vmem [#allocation8], %s604_s22 }
  0x5e   : > { %v291_v6 = vld [vmem:[%s1121_s9 + $0x38] sm:$0xff]  ;;  %v615_v7 = vpack.c.bf16 %v286_v4, %v284_v2  ;;  %v288_v9 = vld [vmem:[%s1121_s9 + $0x20] sm:$0xff]  ;;  %v290_v10 = vld [vmem:[%s1121_s9 + $0x30] sm:$0xff]  ;;  %s477_s26 = sshll.u32 %s256_s11, 4  ;;  %s612_s4 = sshll.u32 %s924_s15, 8  ;;  %s1197_s26 = int_to_ptr.vmem [resolvable:$true] %s477_s26 }
  0x5f   : > { %v617_v8 = vpack.c.bf16 %v291_v6, %v289_v5  ;;  %v293_v11 = vld [vmem:[%s1121_s9 + $0x48] sm:$0xff]  ;;  %614 = vmatprep.subr.bf16.mxu0 %v613_v3  ;;  %677 = vmatprep.subr.bf16.mxu1 %v613_v3  ;;  %v295_v12 = vld [vmem:[%s1121_s9 + $0x58] sm:$0xff]  ;;  %v619_v13 = vpack.c.bf16 %v290_v10, %v288_v9  ;;  %v292_v15 = vld [vmem:[%s1121_s9 + $0x40] sm:$0xff]  ;;  %s1284_s20 = smov (!%p262_p9, %s605_s20), 5  ;;  %s1202_s7 = scalar_lea.hbm %s1253_s3, %s612_s4 }
  0x60   : > { %616 = vmatpush1.bf16.msra.mxu0 %v615_v7  ;;  %693 = vmatpush1.bf16.msra.mxu1 %v615_v7  ;;  %v621_v14 = vpack.c.bf16 %v295_v12, %v293_v11  ;;  %v294_v16 = vld [vmem:[%s1121_s9 + $0x50] sm:$0xff]  ;;  %v297_v17 = vld [vmem:[%s1121_s9 + $0x68] sm:$0xff]  ;;  %v299_v18 = vld [vmem:[%s1121_s9 + $0x78] sm:$0xff]  ;;  %s264_s10 = scalar_lea.vmem %s1252_s2, %s1284_s20  ;;  %s461_s15 = scalar_lea.sflag [#allocation5], %s1117_s28 }
  0x61   : > { %618 = vmatprep.subr.bf16.mxu0 %v617_v8  ;;  %678 = vmatprep.subr.bf16.mxu1 %v617_v8  ;;  %v623_v19 = vpack.c.bf16 %v294_v16, %v292_v15  ;;  %v625_v20 = vpack.c.bf16 %v299_v18, %v297_v17  ;;  %v296_v21 = vld [vmem:[%s1121_s9 + $0x60] sm:$0xff]  ;;  %v298_v22 = vld [vmem:[%s1121_s9 + $0x70] sm:$0xff]  ;;  %v301_v23 = vld [vmem:[%s1121_s9 + $0x88] sm:$0xff]  ;;  %s846_s18 = scalar_lea.vmem %s1197_s26, 512  ;;  %p1274_p4 = scmp.ne.s32.totalorder %s1264_s23, 0 }
  0x62   : > { %v303_v24 = vld [vmem:[%s1121_s9 + $0x98] sm:$0xff]  ;;  %v627_v25 = vpack.c.bf16 %v298_v22, %v296_v21  ;;  %v300_v27 = vld [vmem:[%s1121_s9 + $0x80] sm:$0xff]  ;;  %v302_v28 = vld [vmem:[%s1121_s9 + $0x90] sm:$0xff]  ;;  %p847_p11 = scmp.ne.s32.totalorder %s1197_s26, %s846_s18  ;;  %s939_s8 = smov [#allocation8]  }
  0x63   : > { %v629_v26 = vpack.c.bf16 %v303_v24, %v301_v23  ;;  %v305_v29 = vld [vmem:[%s1121_s9 + $0xa8] sm:$0xff]  ;;  %v307_v30 = vld [vmem:[%s1121_s9 + $0xb8] sm:$0xff]  ;;  %v631_v31 = vpack.c.bf16 %v302_v28, %v300_v27  ;;  %v304_v33 = vld [vmem:[%s1121_s9 + $0xa0] sm:$0xff]  ;;  %s850_s29 = sshll.u32 %s939_s8, 4  ;;  %s851_s29 = int_to_ptr.vmem [resolvable:$false] %s850_s29 }
  0x64   : > { %620 = vmatpush1.bf16.msra.mxu0 %v619_v13  ;;  %694 = vmatpush1.bf16.msra.mxu1 %v619_v13  ;;  %v633_v32 = vpack.c.bf16 %v307_v30, %v305_v29  ;;  %v306_v34 = vld [vmem:[%s1121_s9 + $0xb0] sm:$0xff]  ;;  %v309_v35 = vld [vmem:[%s1121_s9 + $0xc8] sm:$0xff]  ;;  %v311_v36 = vld [vmem:[%s1121_s9 + $0xd8] sm:$0xff]  ;;  %p848_p13 = pnand %p847_p11, %p1274_p4  ;;  %s852_s6 = scalar_lea.vmem %s851_s29, 1024 }
  0x65   : > { %622 = vmatprep.subr.bf16.mxu0 %v621_v14  ;;  %679 = vmatprep.subr.bf16.mxu1 %v621_v14  ;;  %v635_v37 = vpack.c.bf16 %v306_v34, %v304_v33  ;;  %v308_v38 = vld [vmem:[%s1121_s9 + $0xc0] sm:$0xff]  ;;  %v637_v39 = vpack.c.bf16 %v311_v36, %v309_v35  ;;  %v310_v40 = vld [vmem:[%s1121_s9 + $0xd0] sm:$0xff]  ;;  %v281_v41 = vld [vmem:[#allocation3 + $0x8] sm:$0xff]  ;;  %v442_v36 = vlaneseq  ;;  %p853_p10 = scmp.lt.s32.totalorder %s1197_s26, %s851_s29  ;;  %p854_p3 = scmp.lt.s32.totalorder %s852_s6, %s846_s18 }
  0x66   : > { %v283_v42 = vld [vmem:[#allocation3 + $0x18] sm:$0xff]  ;;  %v313_v43 = vld [vmem:[%s1121_s9 + $0xe8] sm:$0xff]  ;;  %412 = vmatprep.mubr.f32.mxu0 %v281_v41  ;;  %v639_v45 = vpack.c.bf16 %v310_v40, %v308_v38  ;;  %v312_v47 = vld [vmem:[%s1121_s9 + $0xe0] sm:$0xff]  ;;  %p849_p0 = pneg %p848_p13 }
  0x67   : > { %v315_v44 = vld [vmem:[%s1121_s9 + $0xf8] sm:$0xff]  ;;  %418 = vmatprep.mubr.f32.mxu1 %v283_v42  ;;  %v314_v48 = vld [vmem:[%s1121_s9 + $0xf0] sm:$0xff]  ;;  %v317_v49 = vld [vmem:[%s1121_s9 + $0x108] sm:$0xff]  ;;  %p855_p6 = por %p854_p3, %p853_p10 }
  0x68   : > { %624 = vmatpush1.bf16.msra.mxu0 %v623_v19  ;;  %695 = vmatpush1.bf16.msra.mxu1 %v623_v19  ;;  %v641_v46 = vpack.c.bf16 %v315_v44, %v313_v43  ;;  %v319_v50 = vld [vmem:[%s1121_s9 + $0x118] sm:$0xff]  ;;  %v643_v51 = vpack.c.bf16 %v314_v48, %v312_v47  ;;  %v316_v53 = vld [vmem:[%s1121_s9 + $0x100] sm:$0xff]  ;;  %v318_v54 = vld [vmem:[%s1121_s9 + $0x110] sm:$0xff] }
  0x69   : > { %626 = vmatprep.subr.bf16.mxu0 %v625_v20  ;;  %680 = vmatprep.subr.bf16.mxu1 %v625_v20  ;;  %v645_v52 = vpack.c.bf16 %v319_v50, %v317_v49  ;;  %v321_v55 = vld [vmem:[%s1121_s9 + $0x128] sm:$0xff]  ;;  %v323_v56 = vld [vmem:[%s1121_s9 + $0x138] sm:$0xff]  ;;  %v647_v57 = vpack.c.bf16 %v318_v54, %v316_v53  ;;  %v320_v59 = vld [vmem:[%s1121_s9 + $0x120] sm:$0xff]  ;;  %p856_p1 = pnand %p855_p6, %p849_p0 }
  0x6a   : > { %v649_v58 = vpack.c.bf16 %v323_v56, %v321_v55  ;;  %v322_v60 = vld [vmem:[%s1121_s9 + $0x130] sm:$0xff]  ;;  %v325_v61 = vld [vmem:[%s1121_s9 + $0x148] sm:$0xff]  ;;  %v327_v62 = vld [vmem:[%s1121_s9 + $0x158] sm:$0xff] }
  0x6b   : > { %v651_v63 = vpack.c.bf16 %v322_v60, %v320_v59  ;;  %v653_v0 = vpack.c.bf16 %v327_v62, %v325_v61  ;;  %v324_v1 = vld [vmem:[%s1121_s9 + $0x140] sm:$0xff]  ;;  %v326_v2 = vld [vmem:[%s1121_s9 + $0x150] sm:$0xff]  ;;  %v329_v3 = vld [vmem:[%s1121_s9 + $0x168] sm:$0xff] }
  0x6c   : > { %628 = vmatpush1.bf16.msra.mxu0 %v627_v25  ;;  %696 = vmatpush1.bf16.msra.mxu1 %v627_v25  ;;  %v331_v4 = vld [vmem:[%s1121_s9 + $0x178] sm:$0xff]  ;;  %v655_v5 = vpack.c.bf16 %v326_v2, %v324_v1  ;;  %v328_v7 = vld [vmem:[%s1121_s9 + $0x160] sm:$0xff]  ;;  %v330_v8 = vld [vmem:[%s1121_s9 + $0x170] sm:$0xff] }
  0x6d   : > { %630 = vmatprep.subr.bf16.mxu0 %v629_v26  ;;  %681 = vmatprep.subr.bf16.mxu1 %v629_v26  ;;  %v657_v6 = vpack.c.bf16 %v331_v4, %v329_v3  ;;  %v333_v9 = vld [vmem:[%s1121_s9 + $0x188] sm:$0xff]  ;;  %v335_v10 = vld [vmem:[%s1121_s9 + $0x198] sm:$0xff]  ;;  %v659_v11 = vpack.c.bf16 %v330_v8, %v328_v7  ;;  %v332_v13 = vld [vmem:[%s1121_s9 + $0x180] sm:$0xff] }
  0x6e   : > { %v661_v12 = vpack.c.bf16 %v335_v10, %v333_v9  ;;  %v334_v14 = vld [vmem:[%s1121_s9 + $0x190] sm:$0xff]  ;;  %v337_v15 = vld [vmem:[%s1121_s9 + $0x1a8] sm:$0xff]  ;;  %v339_v16 = vld [vmem:[%s1121_s9 + $0x1b8] sm:$0xff] }
  0x6f   : > { %v663_v17 = vpack.c.bf16 %v334_v14, %v332_v13  ;;  %v665_v18 = vpack.c.bf16 %v339_v16, %v337_v15  ;;  %v336_v19 = vld [vmem:[%s1121_s9 + $0x1a0] sm:$0xff]  ;;  %v338_v20 = vld [vmem:[%s1121_s9 + $0x1b0] sm:$0xff]  ;;  %v341_v21 = vld [vmem:[%s1121_s9 + $0x1c8] sm:$0xff] }
  0x70   : > { %632 = vmatpush1.bf16.msra.mxu0 %v631_v31  ;;  %697 = vmatpush1.bf16.msra.mxu1 %v631_v31  ;;  %v343_v22 = vld [vmem:[%s1121_s9 + $0x1d8] sm:$0xff]  ;;  %v667_v23 = vpack.c.bf16 %v338_v20, %v336_v19  ;;  %v340_v25 = vld [vmem:[%s1121_s9 + $0x1c0] sm:$0xff]  ;;  %v342_v26 = vld [vmem:[%s1121_s9 + $0x1d0] sm:$0xff] }
  0x71   : > { %634 = vmatprep.subr.bf16.mxu0 %v633_v32  ;;  %682 = vmatprep.subr.bf16.mxu1 %v633_v32  ;;  %v669_v24 = vpack.c.bf16 %v343_v22, %v341_v21  ;;  %v345_v27 = vld [vmem:[%s1121_s9 + $0x1e8] sm:$0xff]  ;;  %v347_v28 = vld [vmem:[%s1121_s9 + $0x1f8] sm:$0xff]  ;;  %v671_v29 = vpack.c.bf16 %v342_v26, %v340_v25  ;;  %v344_v31 = vld [vmem:[%s1121_s9 + $0x1e0] sm:$0xff] }
  0x72   : > { %v673_v30 = vpack.c.bf16 %v347_v28, %v345_v27  ;;  %v346_v32 = vld [vmem:[%s1121_s9 + $0x1f0] sm:$0xff]  ;;  %v280_v34 = vld [vmem:[#allocation3] sm:$0xff] }
  0x73   : > { %v675_v33 = vpack.c.bf16 %v346_v32, %v344_v31  ;;  %v282_v35 = vld [vmem:[#allocation3 + $0x10] sm:$0xff] }
  0x74   : > { %636 = vmatpush1.bf16.msra.mxu0 %v635_v37  ;;  %698 = vmatpush1.bf16.msra.mxu1 %v635_v37  ;;  %v443_v37 = vshrl.u32 %v442_v36, 7 }
  0x75   : > { %638 = vmatprep.subr.bf16.mxu0 %v637_v39  ;;  %683 = vmatprep.subr.bf16.mxu1 %v637_v39  ;;  %v440_v39 = vld [vmem:[%s264_s10] sm:$0x3] }
  0x76   : > { %v444_v38 = vsub.s32 0, %v443_v37  ;;  %v448_v40 = vsub.s32 1, %v443_v37 }
  0x78   : > { %640 = vmatpush1.bf16.msra.mxu0 %v639_v45  ;;  %699 = vmatpush1.bf16.msra.mxu1 %v639_v45  ;;  %v445_v41 = vrot.slane %v440_v39, %v444_v38  ;;  %v449_v42 = vrot.slane %v440_v39, %v448_v40 }
  0x79   : > { %642 = vmatprep.subr.bf16.mxu0 %v641_v46  ;;  %684 = vmatprep.subr.bf16.mxu1 %v641_v46 }
  0x7c   : > { %644 = vmatpush1.bf16.msra.mxu0 %v643_v51  ;;  %700 = vmatpush1.bf16.msra.mxu1 %v643_v51 }
  0x7d   : > { %646 = vmatprep.subr.bf16.mxu0 %v645_v52  ;;  %685 = vmatprep.subr.bf16.mxu1 %v645_v52 }
  0x80   : > { %648 = vmatpush1.bf16.msra.mxu0 %v647_v57  ;;  %701 = vmatpush1.bf16.msra.mxu1 %v647_v57 }
  0x81   : > { %650 = vmatprep.subr.bf16.mxu0 %v649_v58  ;;  %686 = vmatprep.subr.bf16.mxu1 %v649_v58 }
  0x84   : > { %652 = vmatpush1.bf16.msra.mxu0 %v651_v63  ;;  %702 = vmatpush1.bf16.msra.mxu1 %v651_v63 }
  0x85   : > { %654 = vmatprep.subr.bf16.mxu0 %v653_v0  ;;  %687 = vmatprep.subr.bf16.mxu1 %v653_v0 }
  0x88   : > { %656 = vmatpush1.bf16.msra.mxu0 %v655_v5  ;;  %703 = vmatpush1.bf16.msra.mxu1 %v655_v5 }
  0x89   : > { %658 = vmatprep.subr.bf16.mxu0 %v657_v6  ;;  %688 = vmatprep.subr.bf16.mxu1 %v657_v6 }
  0x8c   : > { %660 = vmatpush1.bf16.msra.mxu0 %v659_v11  ;;  %704 = vmatpush1.bf16.msra.mxu1 %v659_v11 }
  0x8d   : > { %662 = vmatprep.subr.bf16.mxu0 %v661_v12  ;;  %689 = vmatprep.subr.bf16.mxu1 %v661_v12 }
  0x90   : > { %664 = vmatpush1.bf16.msra.mxu0 %v663_v17  ;;  %705 = vmatpush1.bf16.msra.mxu1 %v663_v17 }
  0x91   : > { %666 = vmatprep.subr.bf16.mxu0 %v665_v18  ;;  %690 = vmatprep.subr.bf16.mxu1 %v665_v18 }
  0x94   : > { %668 = vmatpush1.bf16.msra.mxu0 %v667_v23  ;;  %706 = vmatpush1.bf16.msra.mxu1 %v667_v23 }
  0x95   : > { %670 = vmatprep.subr.bf16.mxu0 %v669_v24  ;;  %691 = vmatprep.subr.bf16.mxu1 %v669_v24 }
  0x98   : > { %672 = vmatpush1.bf16.msra.mxu0 %v671_v29  ;;  %707 = vmatpush1.bf16.msra.mxu1 %v671_v29 }
  0x99   : > { %674 = vmatprep.subr.bf16.mxu0 %v673_v30  ;;  %692 = vmatprep.subr.bf16.mxu1 %v673_v30 }
  0x9c   : > { %676 = vmatpush1.bf16.msra.mxu0 %v675_v33  ;;  %708 = vmatpush1.bf16.msra.mxu1 %v675_v33 }
  0x9f   : > { %413 = vmatmul.mubr.f32.vlgmr.msra.gmra.mrb[0].mxu0 %v280_v34  ;;  %419 = vmatmul.mubr.f32.vlgmr.msra.gmra.mrb[0].mxu1 %v282_v35 }
 0x172   : > { %v414_v43 = vpop.f32.mrb[0].mxu0  ;;  %v420_v44 = vpop.f32.mrb[0].mxu1 }
 0x173   : > { %v452_v45 = vadd.f32 %v445_v41, %v414_v43  ;;  %v454_v46 = vadd.f32 %v445_v41, %v420_v44  ;;  %v416_v47 = vpop.f32.mrb[1].mxu0  ;;  %v422_v48 = vpop.f32.mrb[1].mxu1 }
 0x174   : > { %v453_v49 = vadd.f32 %v449_v42, %v416_v47  ;;  %v455_v50 = vadd.f32 %v449_v42, %v422_v48 }
 0x175   : > { %456 = vst [vmem:[%s256_s11] sm:$0xff] %v452_v45  ;;  %458 = vst [vmem:[%s256_s11 + $0x10] sm:$0xff] %v454_v46 }
 0x176   : > { %457 = vst [vmem:[%s256_s11 + $0x8] sm:$0xff] %v453_v49  ;;  %459 = vst [vmem:[%s256_s11 + $0x18] sm:$0xff] %v455_v50 }
 0x177   : > { %859 = shalt.err (!%p856_p1)
}
 0x178   : > { %s860_s9 = scalar_lea.hbm %s1202_s7, 512  ;;  %s864_s25 = scalar_lea.hbm %s1253_s3, 1536 }
 0x179   : > { %p861_p5 = scmp.ne.s32.totalorder %s1202_s7, %s860_s9  ;;  %p865_p2 = scmp.lt.u32.totalorder %s1202_s7, %s1253_s3 }
 0x17a   : > { %p866_p8 = scmp.lt.u32.totalorder %s864_s25, %s860_s9  ;;  %p868_p11 = scmp.lt.u32.totalorder %s860_s9, %s1202_s7 }
 0x17b   : > { %p862_p7 = pnand %p861_p5, %p1274_p4 }
 0x17c   : > { %p867_p9 = por %p866_p8, %p865_p2 }
 0x17d   : > { %p863_p12 = pneg %p862_p7 }
 0x17e   : > { %p869_p13 = por %p868_p11, %p867_p9 }
 0x180   : > { %p870_p0 = pnand %p869_p13, %p863_p12 }
 0x182   : > { %873 = shalt.err (!%p870_p0)
}
 0x183   : > { %s940_s11 = smov 256   ;;  %s941_s4 = smov 768  }
 0x184   : > { %s942_s5 = smov 16  }
 0x185   : > { %715 = dma.vmem_to_hbm [thread:$0]  (%p1274_p4), %s1197_s26, 512, %s1202_s7, %s461_s15, %s940_s11, %s941_s4, %s942_s5  }
 0x186 PF: > { %p732_p10 = scmp.ge.s32.totalorder %s932_s17, 2  ;;  %s492_s27 = sand.u32 1, %s912_s12  }
 0x187   : > { %p1275_p3 = scmp.ne.s32.totalorder %s1265_s24, 0  ;;  %s493_s18 = scalar_lea.sflag [#allocation5], %s492_s27 }
 0x189   : > { %p726_p6 = pnand %p732_p10, %p1275_p3 }
 0x18b   : > { %907 = dma.done.wait (!%p726_p6), %s493_s18, 512  }
 0x18c   : > { %909 = vsyncadd (!%p726_p6), %s493_s18, 4294966784  ;;  %s20_s17 = sadd.s32 1, %s932_s17   ;;  %s1276_s12 = smov %s916_s13 }
 0x18d   : > { %p17_p1 = scmp.ge.s32.totalorder %s20_s17, 5   ;;  %s1277_s13 = smov %s920_s14 }
 0x18e   : > { %s1278_s14 = smov %s1076_s21  ;;  %s1279_s15 = smov %s928_s16 }
 0x18f   : > { %s1280_s16 = smov %s1282_s30  ;;  %19 = sbr.rel (!%p17_p1) target bundleno = 7 (0x7), region = 94 }
 0x196   :  { %498 = vsyncpa [#allocation4], 1 }
 0x197   :  { %500 = vsyncpa [#allocation4 + $0x1], 1 }
 0x198   :  { %501 = vsyncpa [#allocation7], 1 }
 0x199   :  { %503 = vsyncpa [#allocation7 + $0x1], 1 }
 0x19a   :  { %504 = vsyncpa [#allocation5], 1 }
 0x19b   :  { %506 = vsyncpa [#allocation5 + $0x1], 1 }

</bundles_post_ra>
